<compile_context>
chip_gen: v6e
topology: v6e:2x2x1
jax: 0.10.0
libtpu: 0.0.40
codegen_flags: <defaults>
</compile_context>

<pallas_src>
import functools

import jax
import jax.numpy as jnp
from jax.experimental import pallas as pl
from jax.experimental.pallas import tpu as pltpu


def _round_up(n, m):
    return ((n + m - 1) // m) * m


def _cdiv(a, b):
    return (a + b - 1) // b


# Only split the batch into >=2 "parallel" grid steps (v7x has 2 TCs) when each
# half still has a decent number of rows.
_MIN_SPLIT_ROWS = 128


def a2c_kernel(beta_ref, x_ref, w_ih_ref, b_ih_ref, w_ac_ref, b_ac_ref, out_ref,
               *, dim_output):
    # ---- hidden layer: relu(x @ W_ih + b_ih) ----
    # bf16 MXU operands, f32 accumulation; bias/relu in f32.
    x = x_ref[...].astype(jnp.bfloat16)                              # (Bt, Din)
    h = jnp.dot(x, w_ih_ref[...], preferred_element_type=jnp.float32)
    h = jnp.maximum(h + b_ih_ref[...], 0.0)                          # (Bt, Ph) f32

    # ---- fused actor+critic head: one MXU matmul ----
    z = jnp.dot(h.astype(jnp.bfloat16), w_ac_ref[...],
                preferred_element_type=jnp.float32)
    z = z + b_ac_ref[...]                                            # (Bt, 128) f32

    col = jax.lax.broadcasted_iota(jnp.int32, z.shape, 1)
    is_actor = col < dim_output
    is_value = col == dim_output

    # ---- softmax over the (masked) actor columns, temperature from SMEM ----
    inv_beta = beta_ref[0, 0]                                        # scalar f32
    neg = jnp.float32(-1e30)
    logits = jnp.where(is_actor, z * inv_beta, neg)
    m = jnp.max(logits, axis=-1, keepdims=True)
    e = jnp.exp(logits - m)                                          # pads -> 0
    denom = jnp.sum(e, axis=-1, keepdims=True)
    pi = e * pl.reciprocal(denom, approx=True)                       # EUP vrcp

    # Lane-dense output slab: [ pi | v | zeros ]
    out_ref[...] = jnp.where(is_actor, pi, jnp.where(is_value, z, 0.0))


@functools.partial(jax.jit, static_argnames=("dim_output", "block_b"))
def a2c_forward(packed_params, x, beta, *, dim_output, block_b=256):
    """x: (Din,) or (B, Din) f32.  Returns (pi, v).

    (Din,)    -> pi: (dim_output,),    v: (1,)
    (B, Din)  -> pi: (B, dim_output),  v: (B, 1)
    """
    w_ih, b_ih, w_ac, b_ac = packed_params
    din, p_h = w_ih.shape
    p_out = w_ac.shape[1]

    x = jnp.asarray(x, jnp.float32)
    single = (x.ndim == 1)
    if single:
        x = x[None, :]
    B = x.shape[0]

    # ---- static batch-tile selection (no host-side padding of x) ----
    block_b = _round_up(block_b, 8)
    b8 = _round_up(B, 8)
    if b8 > block_b:
        bt = block_b                       # big batch: block_b tiles
    elif b8 >= 2 * _MIN_SPLIT_ROWS:
        bt = _round_up(_cdiv(b8, 2), 8)    # ensure >=2 "parallel" steps (v7x)
    else:
        bt = b8                            # small batch: one (partial) tile
    grid = (_cdiv(B, bt),)

    # Temperature as a tiny SMEM scalar (applied in-kernel; no weight rescale).
    inv_beta = (jnp.float32(1.0) / jnp.asarray(beta, jnp.float32)).reshape(1, 1)

    kernel = functools.partial(a2c_kernel, dim_output=dim_output)

    out = pl.pallas_call(
        kernel,
        out_shape=jax.ShapeDtypeStruct((B, p_out), jnp.float32),
        grid=grid,
        in_specs=[
            pl.BlockSpec(memory_space=pltpu.MemorySpace.SMEM),   # inv_beta (1,1)
            pl.BlockSpec((bt, din), lambda i: (i, 0)),           # x batch tile
            pl.BlockSpec((din, p_h), lambda i: (0, 0)),          # weights stay
            pl.BlockSpec((1, p_h), lambda i: (0, 0)),            #   VMEM-resident
            pl.BlockSpec((p_h, p_out), lambda i: (0, 0)),
            pl.BlockSpec((1, p_out), lambda i: (0, 0)),
        ],
        out_specs=pl.BlockSpec((bt, p_out), lambda i: (i, 0)),
        compiler_params=pltpu.CompilerParams(
            dimension_semantics=("parallel",),
            vmem_limit_bytes=32 * 1024 * 1024),
    )(inv_beta, x, w_ih, b_ih, w_ac, b_ac)

    pi = out[:, :dim_output]
    v = out[:, dim_output:dim_output + 1]
    if single:
        return pi[0], v[0]
    return pi, v


def init_a2c_params(key, dim_input, dim_hidden, dim_output):
    """Deterministic init mimicking nn.Linear's U(-1/sqrt(fan_in), 1/sqrt(fan_in)).

    Weights are stored transposed relative to PyTorch, i.e. (in, out)."""
    ks = jax.random.split(key, 6)

    def linear(kw, kb, fan_in, fan_out):
        bound = 1.0 / jnp.sqrt(fan_in)
        w = jax.random.uniform(kw, (fan_in, fan_out), jnp.float32, -bound, bound)
        b = jax.random.uniform(kb, (fan_out,), jnp.float32, -bound, bound)
        return w, b

    w_ih, b_ih = linear(ks[0], ks[1], dim_input, dim_hidden)
    w_a, b_a = linear(ks[2], ks[3], dim_hidden, dim_output)
    w_c, b_c = linear(ks[4], ks[5], dim_hidden, 1)
    return (w_ih, b_ih, w_a, b_a, w_c, b_c)


def pack_params(raw_params, dim_input, dim_hidden, dim_output,
                weight_dtype=jnp.bfloat16):
    """One-time pack: zero-pad hidden/output dims to 128, fuse actor+critic into
    a single head, and cast weights to the MXU-native dtype (biases stay f32)."""
    w_ih, b_ih, w_a, b_a, w_c, b_c = raw_params
    p_h = _round_up(dim_hidden, 128)
    p_out = _round_up(dim_output + 1, 128)

    w_ih_p = jnp.zeros((dim_input, p_h), jnp.float32)
    w_ih_p = w_ih_p.at[:, :dim_hidden].set(w_ih)
    b_ih_p = jnp.zeros((1, p_h), jnp.float32).at[0, :dim_hidden].set(b_ih)

    w_ac_p = jnp.zeros((p_h, p_out), jnp.float32)
    w_ac_p = w_ac_p.at[:dim_hidden, :dim_output].set(w_a)
    w_ac_p = w_ac_p.at[:dim_hidden, dim_output:dim_output + 1].set(w_c)

    b_ac_p = jnp.zeros((1, p_out), jnp.float32)
    b_ac_p = b_ac_p.at[0, :dim_output].set(b_a)
    b_ac_p = b_ac_p.at[0, dim_output].set(b_c[0])

    return (w_ih_p.astype(weight_dtype), b_ih_p,
            w_ac_p.astype(weight_dtype), b_ac_p)


def a2c_forward_ref(raw_params, x, beta):
    """Pure-JAX f32 reference for correctness checking (x: (B, Din))."""
    w_ih, b_ih, w_a, b_a, w_c, b_c = raw_params
    h = jnp.maximum(x @ w_ih + b_ih, 0.0)
    pi = jax.nn.softmax((h @ w_a + b_a) / beta, axis=-1)
    v = h @ w_c + b_c
    return pi, v


def pick_action(key, pi):
    """Action sampling (torch.distributions.Categorical) — plain JAX, no kernel."""
    a = jax.random.categorical(key, jnp.log(pi))
    return a, jnp.log(pi[a])


if __name__ == "__main__":
    dim_input, dim_hidden, dim_output = 16, 32, 8
    batch = 8          # e.g. 8 parallel environments
    beta = 1.0

    key = jax.random.PRNGKey(0)
    k_params, k_x, k_x2, k_a = jax.random.split(key, 4)
    raw = init_a2c_params(k_params, dim_input, dim_hidden, dim_output)
    packed = pack_params(raw, dim_input, dim_hidden, dim_output)
    xb = jax.random.normal(k_x, (batch, dim_input), jnp.float32)

    # --- batched path ---
    pi_b, v_b = a2c_forward(packed, xb, beta, dim_output=dim_output)
    jax.block_until_ready((pi_b, v_b))

    pi_ref, v_ref = a2c_forward_ref(raw, xb, beta)
    assert pi_b.shape == (batch, dim_output) and v_b.shape == (batch, 1)
    # bf16 MXU operands + approx reciprocal -> loosened tolerances vs f32 ref.
    assert jnp.allclose(pi_b, pi_ref, atol=3e-2, rtol=3e-2)
    assert jnp.allclose(v_b, v_ref, atol=3e-2, rtol=3e-2)
    assert jnp.allclose(jnp.sum(pi_b, axis=-1), 1.0, atol=5e-3)

    # --- non-multiple-of-tile batch: exercises the cdiv grid / masked tail ---
    xb2 = jax.random.normal(k_x2, (37, dim_input), jnp.float32)
    pi2, v2 = a2c_forward(packed, xb2, beta, dim_output=dim_output)
    jax.block_until_ready((pi2, v2))
    pi2_ref, v2_ref = a2c_forward_ref(raw, xb2, beta)
    assert pi2.shape == (37, dim_output) and v2.shape == (37, 1)
    assert jnp.allclose(pi2, pi2_ref, atol=3e-2, rtol=3e-2)
    assert jnp.allclose(v2, v2_ref, atol=3e-2, rtol=3e-2)

    # --- single-state path (matches original module's forward(x, beta=2)) ---
    pi1, v1 = a2c_forward(packed, xb[0], 2.0, dim_output=dim_output)
    jax.block_until_ready((pi1, v1))
    pi1_ref, v1_ref = a2c_forward_ref(raw, xb[:1], 2.0)
    assert pi1.shape == (dim_output,) and v1.shape == (1,)
    assert jnp.allclose(pi1, pi1_ref[0], atol=3e-2, rtol=3e-2)
    assert jnp.allclose(v1, v1_ref[0], atol=3e-2, rtol=3e-2)

    a_t, logp = pick_action(k_a, pi1)   # sampling stays in plain JAX
    jax.block_until_ready((a_t, logp))

    print("KERNEL_OK")
</pallas_src>

<mosaic_0001>
module attributes {stable_mosaic.version = 11 : i64} {
  func.func @a2c_kernel(%arg0: i32, %arg1: memref<1x1xf32, #tpu.memory_space<smem>>, %arg2: memref<8x16xf32, #tpu.memory_space<vmem>>, %arg3: memref<16x128xbf16, #tpu.memory_space<vmem>>, %arg4: memref<1x128xf32, #tpu.memory_space<vmem>>, %arg5: memref<128x128xbf16, #tpu.memory_space<vmem>>, %arg6: memref<1x128xf32, #tpu.memory_space<vmem>>, %arg7: memref<8x128xf32, #tpu.memory_space<vmem>>) attributes {dimension_semantics = [#tpu.dimension_semantics<parallel>], iteration_bounds = array<i64: 1>, scalar_prefetch = 0 : i64, scratch_operands = 0 : i64, tpu.core_type = #tpu.core_type<tc>, window_params = [{transform_indices = @transform_0, window_bounds = array<i64: 1, 1>}, {transform_indices = @transform_1, window_bounds = array<i64: 8, 16>}, {pipeline_mode = #tpu.pipeline_mode<synchronous>, transform_indices = @transform_2, window_bounds = array<i64: 16, 128>}, {pipeline_mode = #tpu.pipeline_mode<synchronous>, transform_indices = @transform_3, window_bounds = array<i64: 1, 128>}, {pipeline_mode = #tpu.pipeline_mode<synchronous>, transform_indices = @transform_4, window_bounds = array<i64: 128, 128>}, {pipeline_mode = #tpu.pipeline_mode<synchronous>, transform_indices = @transform_5, window_bounds = array<i64: 1, 128>}, {transform_indices = @transform_6, window_bounds = array<i64: 8, 128>}]} {
    %c0 = arith.constant 0 : index
    %c0_0 = arith.constant 0 : index
    %0 = vector.load %arg2[%c0, %c0_0] : memref<8x16xf32, #tpu.memory_space<vmem>>, vector<8x16xf32>
    %1 = arith.truncf %0 : vector<8x16xf32> to vector<8x16xbf16>
    %c0_1 = arith.constant 0 : index
    %c0_2 = arith.constant 0 : index
    %2 = vector.load %arg3[%c0_1, %c0_2] : memref<16x128xbf16, #tpu.memory_space<vmem>>, vector<16x128xbf16>
    %cst = arith.constant dense<0.000000e+00> : vector<8x128xf32>
    %3 = tpu.matmul %1, %2, %cst {dimension_numbers = #tpu.dot_dimension_numbers<[1], [0], [0], [1], [0, 0, 1, 1], [], []>} : vector<8x16xbf16>, vector<16x128xbf16>, vector<8x128xf32> -> vector<8x128xf32>
    %c0_3 = arith.constant 0 : index
    %c0_4 = arith.constant 0 : index
    %4 = vector.load %arg4[%c0_3, %c0_4] : memref<1x128xf32, #tpu.memory_space<vmem>>, vector<1x128xf32>
    %5 = vector.broadcast %4 : vector<1x128xf32> to vector<8x128xf32>
    %6 = arith.addf %3, %5 : vector<8x128xf32>
    %cst_5 = arith.constant 0.000000e+00 : f32
    %7 = vector.broadcast %cst_5 : f32 to vector<8x128xf32>
    %8 = arith.maximumf %6, %7 : vector<8x128xf32>
    %9 = arith.truncf %8 : vector<8x128xf32> to vector<8x128xbf16>
    %c0_6 = arith.constant 0 : index
    %c0_7 = arith.constant 0 : index
    %10 = vector.load %arg5[%c0_6, %c0_7] : memref<128x128xbf16, #tpu.memory_space<vmem>>, vector<128x128xbf16>
    %cst_8 = arith.constant dense<0.000000e+00> : vector<8x128xf32>
    %11 = tpu.matmul %9, %10, %cst_8 {dimension_numbers = #tpu.dot_dimension_numbers<[1], [0], [0], [1], [0, 0, 1, 1], [], []>} : vector<8x128xbf16>, vector<128x128xbf16>, vector<8x128xf32> -> vector<8x128xf32>
    %c0_9 = arith.constant 0 : index
    %c0_10 = arith.constant 0 : index
    %12 = vector.load %arg6[%c0_9, %c0_10] : memref<1x128xf32, #tpu.memory_space<vmem>>, vector<1x128xf32>
    %13 = vector.broadcast %12 : vector<1x128xf32> to vector<8x128xf32>
    %14 = arith.addf %11, %13 : vector<8x128xf32>
    %15 = tpu.iota {dimensions = array<i32: 1>} : vector<8x128xi32>
    %c8_i32 = arith.constant 8 : i32
    %16 = vector.broadcast %c8_i32 : i32 to vector<8x128xi32>
    %17 = arith.cmpi slt, %15, %16 : vector<8x128xi32>
    %c8_i32_11 = arith.constant 8 : i32
    %18 = vector.broadcast %c8_i32_11 : i32 to vector<8x128xi32>
    %19 = arith.cmpi eq, %15, %18 : vector<8x128xi32>
    %c0_12 = arith.constant 0 : index
    %c0_13 = arith.constant 0 : index
    %20 = memref.load %arg1[%c0_12, %c0_13] : memref<1x1xf32, #tpu.memory_space<smem>>
    %21 = vector.broadcast %20 : f32 to vector<8x128xf32>
    %22 = arith.mulf %14, %21 : vector<8x128xf32>
    %cst_14 = arith.constant -1.000000e+30 : f32
    %23 = vector.broadcast %cst_14 : f32 to vector<8x128xf32>
    %24 = arith.select %17, %22, %23 : vector<8x128xi1>, vector<8x128xf32>
    %cst_15 = arith.constant dense<0xFF800000> : vector<8xf32>
    %25 = vector.multi_reduction <maximumf>, %24, %cst_15 [1] : vector<8x128xf32> to vector<8xf32>
    %26 = vector.shape_cast %25 : vector<8xf32> to vector<8x1xf32>
    %27 = vector.broadcast %26 : vector<8x1xf32> to vector<8x128xf32>
    %28 = arith.subf %24, %27 : vector<8x128xf32>
    %29 = math.exp %28 : vector<8x128xf32>
    %cst_16 = arith.constant dense<0.000000e+00> : vector<8xf32>
    %30 = vector.multi_reduction <add>, %29, %cst_16 [1] : vector<8x128xf32> to vector<8xf32>
    %31 = vector.shape_cast %30 : vector<8xf32> to vector<8x1xf32>
    %32 = tpu.reciprocal %31 {approx = true} : vector<8x1xf32> -> vector<8x1xf32>
    %33 = vector.broadcast %32 : vector<8x1xf32> to vector<8x128xf32>
    %34 = arith.mulf %29, %33 : vector<8x128xf32>
    %cst_17 = arith.constant 0.000000e+00 : f32
    %35 = vector.broadcast %cst_17 : f32 to vector<8x128xf32>
    %36 = arith.select %19, %14, %35 : vector<8x128xi1>, vector<8x128xf32>
    %37 = arith.select %17, %34, %36 : vector<8x128xi1>, vector<8x128xf32>
    %c0_18 = arith.constant 0 : index
    %c0_19 = arith.constant 0 : index
    %38 = vector.load %arg7[%c0_18, %c0_19] : memref<8x128xf32, #tpu.memory_space<vmem>>, vector<8x128xf32>
    tpu.vector_store %arg7[%c0_18, %c0_19], %37 {strides = array<i32>} : memref<8x128xf32, #tpu.memory_space<vmem>>, vector<8x128xf32>,
    return
  }
  func.func @transform_0(%arg0: i32) -> (i32, i32) {
    %c0_i32 = arith.constant 0 : i32
    %c0_i32_0 = arith.constant 0 : i32
    %c0_i32_1 = arith.constant 0 : i32
    return %c0_i32, %c0_i32_0 : i32, i32
  }
  func.func @transform_1(%arg0: i32) -> (i32, i32) {
    %c0_i32 = arith.constant 0 : i32
    %c0_i32_0 = arith.constant 0 : i32
    return %arg0, %c0_i32 : i32, i32
  }
  func.func @transform_2(%arg0: i32) -> (i32, i32) {
    %c0_i32 = arith.constant 0 : i32
    %c0_i32_0 = arith.constant 0 : i32
    %c0_i32_1 = arith.constant 0 : i32
    return %c0_i32, %c0_i32_0 : i32, i32
  }
  func.func @transform_3(%arg0: i32) -> (i32, i32) {
    %c0_i32 = arith.constant 0 : i32
    %c0_i32_0 = arith.constant 0 : i32
    %c0_i32_1 = arith.constant 0 : i32
    return %c0_i32, %c0_i32_0 : i32, i32
  }
  func.func @transform_4(%arg0: i32) -> (i32, i32) {
    %c0_i32 = arith.constant 0 : i32
    %c0_i32_0 = arith.constant 0 : i32
    %c0_i32_1 = arith.constant 0 : i32
    return %c0_i32, %c0_i32_0 : i32, i32
  }
  func.func @transform_5(%arg0: i32) -> (i32, i32) {
    %c0_i32 = arith.constant 0 : i32
    %c0_i32_0 = arith.constant 0 : i32
    %c0_i32_1 = arith.constant 0 : i32
    return %c0_i32, %c0_i32_0 : i32, i32
  }
  func.func @transform_6(%arg0: i32) -> (i32, i32) {
    %c0_i32 = arith.constant 0 : i32
    %c0_i32_0 = arith.constant 0 : i32
    return %arg0, %c0_i32 : i32, i32
  }
}

</mosaic_0001>

<bundles_post_ra>
// kernel: a2c_forward.1
= control target key start
LH: loop header
LB: loop body
LE: loop exit
PB: predicated region body
PF: predicated region fallthrough
CT: control target
= control target key end

     0   :  { %12 = vsyncpa [#allocation4], 0  ;;  %s429_s0 = inlined_call_operand.<no memory space> [shape: f32[1,1], index: 0, kind: input, shape index: {}]   ;;  %s430_s1 = inlined_call_operand.vmem [shape: f32[8,16], index: 1, kind: input, shape index: {}]   ;;  %s431_s2 = inlined_call_operand.hbm [shape: bf16[16,128], index: 2, kind: input, shape index: {}]   ;;  %s432_s3 = inlined_call_operand.vmem [shape: f32[1,128], index: 3, kind: input, shape index: {}]   ;;  %s433_s4 = inlined_call_operand.hbm [shape: bf16[128,128], index: 4, kind: input, shape index: {}]   ;;  %s434_s5 = inlined_call_operand.vmem [shape: f32[1,128], index: 5, kind: input, shape index: {}]   ;;  %s435_s6 = inlined_call_operand.vmem [shape: f32[8,128], index: 6, kind: output, shape index: {}]  }
   0x1   :  { %13 = vsyncpa [#allocation6], 0  ;;  %s365_s21 = smov [#allocation3]  }
   0x2   :  { %s23_s22 = sshll.u32 %s365_s21, 4  ;;  %s24_s22 = int_to_ptr.vmem [resolvable:$true] %s23_s22 }
   0x3   :  { %s329_s23 = scalar_lea.vmem %s24_s22, 128  ;;  %p334_p1 = scmp.lt.s32.totalorder %s24_s22, %s24_s22 }
   0x4   :  { %p330_p0 = scmp.ne.s32.totalorder %s24_s22, %s329_s23  ;;  %p335_p2 = scmp.lt.s32.totalorder %s329_s23, %s329_s23 }
   0x6   :  { %p336_p3 = por %p335_p2, %p334_p1 }
   0x8   :  { %p337_p4 = pnand %p336_p3, %p330_p0 }
   0xa   :  { %340 = shalt.err (!%p337_p4)
}
   0xb   :  { %s366_s24 = smov 64   ;;  %s367_s25 = smov 4  }
   0xc   :  { %29 = dma.hbm_to_vmem [thread:$0]  %s431_s2, 128, %s24_s22, [#allocation4], %s366_s24, %s366_s24, %s367_s25  }
   0xd   :  { %s368_s28 = smov [#allocation5]  }
   0xe   :  { %s37_s29 = sshll.u32 %s368_s28, 4  ;;  %s38_s29 = int_to_ptr.vmem [resolvable:$true] %s37_s29 }
   0xf   :  { %s349_s30 = scalar_lea.vmem %s38_s29, 1024  ;;  %p354_p6 = scmp.lt.s32.totalorder %s38_s29, %s38_s29 }
  0x10   :  { %p350_p5 = scmp.ne.s32.totalorder %s38_s29, %s349_s30  ;;  %p355_p7 = scmp.lt.s32.totalorder %s349_s30, %s349_s30 }
  0x12   :  { %p356_p8 = por %p355_p7, %p354_p6 }
  0x14   :  { %p357_p9 = pnand %p356_p8, %p350_p5 }
  0x16   :  { %360 = shalt.err (!%p357_p9)
}
  0x17   :  { %43 = dma.hbm_to_vmem [thread:$0]  %s433_s4, 1024, %s38_s29, [#allocation6], %s366_s24, %s366_s24, %s367_s25  }
  0x18   :  { %361 = dma.done.wait [#allocation4], 128  }
  0x19   :  { %362 = vsyncadd [#allocation4], 4294967168 }
  0x1a   :  { %363 = dma.done.wait [#allocation6], 1024  }
  0x1b   :  { %364 = vsyncadd [#allocation6], 4294966272  ;;  %v369_v0 = vmov 0.0   ;;  %vm370_vm0 = vmmov 0   ;;  %v308_v1 = vld [vmem:[#allocation3] sm:$0xff]   ;;  %vm70_vm1 = vcmask 130048   ;;  %v227_v20 = vlaneseq }
  0x1c   :  { %276 = vmatprep.subr.bf16.mxu0 %v369_v0  ;;  %278 = vmatprep.mubr.msk.bf16.mxu0 %vm370_vm0, %v369_v0  ;;  %v53_v2 = vld [vmem:[%s430_s1] sm:$0xff]  ;;  %v310_v5 = vld [vmem:[#allocation5 + $0x30] sm:$0xff]   ;;  %v311_v6 = vld [vmem:[#allocation5 + $0x28] sm:$0xff]   ;;  %v232_v24 = vstv %s429_s0 }
  0x1d   :  { %282 = vmatprep.subr.bf16.mxu1 %v369_v0  ;;  %298 = vmatprep.mubr.msk.bf16.mxu1 %vm370_vm0, %v369_v0  ;;  %v54_v3 = vpack.c.bf16 %v53_v2, %v53_v2  ;;  %v309_v4 = vld [vmem:[#allocation5 + $0x38] sm:$0xff]   ;;  %v312_v7 = vld [vmem:[#allocation5 + $0x20] sm:$0xff]   ;;  %v314_v9 = vld [vmem:[#allocation5 + $0x10] sm:$0xff]   ;;  %v228_v21 = vand.u32 127, %v227_v20 }
  0x1e   :  { %277 = vmatpush3.bf16.msra.mxu0 %v308_v1  ;;  %283 = vmatpush3.bf16.msra.mxu1 %v309_v4  ;;  %v313_v8 = vld [vmem:[#allocation5 + $0x18] sm:$0xff]   ;;  %v315_v10 = vld [vmem:[#allocation5 + $0x8] sm:$0xff]   ;;  %v316_v11 = vld [vmem:[#allocation5] sm:$0xff]  }
  0x1f   :  { %284 = vmatprep.subr.bf16.mxu1 %v369_v0  ;;  %v253_v12 = vld [vmem:[%s432_s3] ss:$0 sm:$0xff]  ;;  %vm230_vm2 = vcmp.eq.s32.totalorder %v228_v21, 8  ;;  %vm229_vm3 = vcmp.lt.s32.totalorder %v228_v21, 8 }
  0x20   :  { %v256_v22 = vld [vmem:[%s434_s5] ss:$0 sm:$0xff] }
  0x21   :  { %279 = vmatmul.mubr.msk.bf16.vlgmr.msra.gmra.mxu0 %vm70_vm1, %v54_v3 }
  0x22   :  { %285 = vmatpush3.bf16.msra.mxu1 %v310_v5 }
  0x23   :  { %286 = vmatprep.subr.bf16.mxu1 %v369_v0 }
  0x26   :  { %287 = vmatpush3.bf16.msra.mxu1 %v311_v6 }
  0x27   :  { %288 = vmatprep.subr.bf16.mxu1 %v369_v0 }
  0x2a   :  { %289 = vmatpush3.bf16.msra.mxu1 %v312_v7 }
  0x2b   :  { %290 = vmatprep.subr.bf16.mxu1 %v369_v0 }
  0x2e   :  { %291 = vmatpush3.bf16.msra.mxu1 %v313_v8 }
  0x2f   :  { %292 = vmatprep.subr.bf16.mxu1 %v369_v0 }
  0x32   :  { %293 = vmatpush3.bf16.msra.mxu1 %v314_v9 }
  0x33   :  { %294 = vmatprep.subr.bf16.mxu1 %v369_v0 }
  0x36   :  { %295 = vmatpush3.bf16.msra.mxu1 %v315_v10 }
  0x37   :  { %296 = vmatprep.subr.bf16.mxu1 %v369_v0 }
  0x3a   :  { %297 = vmatpush3.bf16.msra.mxu1 %v316_v11 }
  0xe1   :  { %v108_v13 = vpop.f32.mrf.mxu0 }
  0xe2   :  { %v109_v14 = vadd.f32 %v253_v12, %v108_v13 }
  0xe3   :  { %v280_v15 = vpop.f32.mrf.mxu0 }
  0xe4   :  { %v114_v16 = vmax.f32 %v109_v14, 0.0 }
  0xe5   :  { %v111_v17 = vpop.f32.mrf.mxu0 }
  0xe6   :  { %v115_v18 = vpack.c.bf16 %v114_v16, %v114_v16 }
  0xe7   :  { %v281_v19 = vpop.f32.mrf.mxu0 }
  0xe8   :  { %299 = vmatmul.mubr.bf16.vlgmr.msra.gmra.mxu1 %v115_v18 }
 0x1a8   :  { %v221_v23 = vpop.f32.mrf.mxu1 }
 0x1a9   :  { %v222_v25 = vadd.f32 %v256_v22, %v221_v23 }
 0x1aa   :  { %v300_v26 = vpop.f32.mrf.mxu1 }
 0x1ab   :  { %v244_v27 = vsel %vm230_vm2, %v222_v25, 0.0  ;;  %v233_v28 = vmul.f32 %v232_v24, %v222_v25 }
 0x1ac   :  { %v224_v29 = vpop.f32.mrf.mxu1 }
 0x1ad   :  { %v234_v30 = vsel %vm229_vm3, %v233_v28, -1e+30 }
 0x1ae   :  { %235 = vmax.xlane.f32.xlu0 %v234_v30  ;;  %v301_v31 = vpop.f32.mrf.mxu1 }
 0x237   :  { %v236_v32 = vpop.xlane.xlu0 %235 }
 0x238   :  { %v237_v33 = vsub.f32 %v234_v30, %v236_v32 }
 0x23a   :  { %v238_v34 = vmul.f32 1.442695, %v237_v33 }
 0x23c   :  { %317 = vpow2.f32 %v238_v34 }
 0x249   :  { %v318_v35 = vpop.eup %317 }
 0x24a   :  { %240 = vadd.xlane.f32.xlu0 %v318_v35 }
 0x2d3   :  { %v241_v36 = vpop.xlane.xlu0 %240 }
 0x2d4   :  { %319 = vrcp.f32 %v241_v36 }
 0x2e1   :  { %v320_v37 = vpop.eup %319 }
 0x2e2   :  { %v243_v38 = vmul.f32 %v320_v37, %v318_v35 }
 0x2e4   :  { %v245_v39 = vsel %vm229_vm3, %v243_v38, %v244_v27 }
 0x2e5   :  { %246 = vst [vmem:[%s435_s6] sm:$0xff] %v245_v39 }
 0x2e6   :  { %251 = vsyncpa [#allocation4], 1 }
 0x2e7   :  { %252 = vsyncpa [#allocation6], 1 }

</bundles_post_ra>
